<compile_context>
chip_gen: v5e
topology: v5e:2x2
jax: 0.10.0
libtpu: 0.0.40
codegen_flags: <defaults>
</compile_context>

<pallas_src>
import jax
import jax.numpy as jnp
from jax.experimental import pallas as pl
from jax.experimental.pallas import tpu as pltpu


# ---------------------------------------------------------------------------
# Config (small, consistent with SiglipVisionConfig semantics)
# ---------------------------------------------------------------------------
BATCH = 2
CHANNELS = 3                      # nn.Conv2d(in_channels=3, ...) is hard-coded
IMG = 32                          # img_size
PATCH = 8                         # patch_size
EMBED = 128                       # hidden_size / embed_dim (lane-dense)
GRID_HW = IMG // PATCH            # patches per side
N_PATCH = GRID_HW * GRID_HW       # num_patches = num_positions = 16
PATCH_DIM = CHANNELS * PATCH * PATCH  # K = 192


# ---------------------------------------------------------------------------
# Pallas kernel: patch-embed matmul + (bias+pos) add, whole batch, one step
# ---------------------------------------------------------------------------
def embeddings_kernel(x_ref, w_ref, add_ref, o_ref):
    # x_ref  : (B*N, K)   im2col'd patches
    # w_ref  : (K, D)     flattened conv weight (pre-transposed at init)
    # add_ref: (B*N, D)   pos_table + conv_bias, pre-tiled over the batch
    # o_ref  : (B*N, D)
    y = jnp.dot(x_ref[...], w_ref[...], preferred_element_type=jnp.float32)
    o_ref[...] = (y + add_ref[...]).astype(o_ref.dtype)   # one full-block vst


# ---------------------------------------------------------------------------
# One-time parameter prep (model init, NOT the per-forward hot path)
# ---------------------------------------------------------------------------
def prepare_embedding_params(conv_w, conv_b, pos_table, batch):
    """conv_w: (D, C, P, P); conv_b: (D,); pos_table: (N, D).
    Returns (w_flat (K, D), add_table (batch*N, D))."""
    D, C, P, _ = conv_w.shape
    K = C * P * P
    w_flat = jnp.asarray(conv_w.reshape(D, K).T)                  # (K, D)
    # Fold the conv bias into the position table and tile over the batch so
    # the kernel does a single full-block add (position_ids == arange(N)).
    add_table = jnp.tile(pos_table + conv_b[None, :], (batch, 1))  # (B*N, D)
    return w_flat, add_table


# ---------------------------------------------------------------------------
# Per-call forward (jitted: im2col fuses into the pallas operand)
# ---------------------------------------------------------------------------
@jax.jit
def siglip_vision_embeddings(pixel_values, w_flat, add_table):
    """pixel_values: (B, C, H, W); w_flat: (K, D); add_table: (B*N, D).
    Returns (B, N, D) embeddings."""
    B, C, H, W = pixel_values.shape
    P = PATCH
    hp, wp = H // P, W // P
    n = hp * wp
    K = C * P * P
    D = w_flat.shape[1]

    # ---- layout plumbing only: extract non-overlapping patches so the
    # strided conv becomes a single MXU matmul.
    patches = pixel_values.reshape(B, C, hp, P, wp, P)
    patches = patches.transpose(0, 2, 4, 1, 3, 5)       # (B, hp, wp, C, P, P)
    patches = patches.reshape(B * n, K)                 # (B*N, K)

    out = pl.pallas_call(
        embeddings_kernel,
        out_shape=jax.ShapeDtypeStruct((B * n, D), pixel_values.dtype),
        grid=(1,),                                      # single step: whole batch
        in_specs=[
            pl.BlockSpec((B * n, K), lambda i: (0, 0)),
            pl.BlockSpec((K, D), lambda i: (0, 0)),
            pl.BlockSpec((B * n, D), lambda i: (0, 0)),
        ],
        out_specs=pl.BlockSpec((B * n, D), lambda i: (0, 0)),
        compiler_params=pltpu.CompilerParams(
            dimension_semantics=("arbitrary",),
            # Let the im2col reshape/transpose fuse into the patches operand
            # instead of materializing a separate HBM buffer.
            allow_input_fusion=[True, False, False],
        ),
    )(patches, w_flat, add_table)

    return out.reshape(B, n, D)


# ---------------------------------------------------------------------------
# Pure-JAX reference (mirrors the PyTorch forward, via a real strided conv)
# ---------------------------------------------------------------------------
def _ref_embeddings(pixel_values, conv_w, conv_b, pos_table):
    out = jax.lax.conv_general_dilated(
        pixel_values, conv_w,
        window_strides=(PATCH, PATCH), padding="VALID",
        dimension_numbers=("NCHW", "OIHW", "NCHW"))      # (B, D, hp, wp)
    out = out + conv_b[None, :, None, None]
    B, D = out.shape[0], out.shape[1]
    emb = out.reshape(B, D, -1).transpose(0, 2, 1)       # flatten(2).transpose(1,2)
    return emb + pos_table[None]                         # pos_embeds(position_ids)


# ---------------------------------------------------------------------------
if __name__ == "__main__":
    key = jax.random.PRNGKey(0)
    k_x, k_w, k_b, k_pos = jax.random.split(key, 4)

    pixel_values = jax.random.normal(
        k_x, (BATCH, CHANNELS, IMG, IMG), dtype=jnp.float32)
    conv_w = 0.02 * jax.random.normal(
        k_w, (EMBED, CHANNELS, PATCH, PATCH), dtype=jnp.float32)
    conv_b = 0.02 * jax.random.normal(k_b, (EMBED,), dtype=jnp.float32)
    pos_table = 0.02 * jax.random.normal(k_pos, (N_PATCH, EMBED), dtype=jnp.float32)

    # One-time init-style prep of the static parameters (out of the hot path).
    # NOTE: position_ids == arange(N) shortcut matches the module as written;
    # an interpolate_pos_encoding / non-arange path would need a real gather.
    w_flat, add_table = prepare_embedding_params(conv_w, conv_b, pos_table, BATCH)

    out = jax.block_until_ready(
        siglip_vision_embeddings(pixel_values, w_flat, add_table))
    ref = jax.block_until_ready(
        _ref_embeddings(pixel_values, conv_w, conv_b, pos_table))

    assert out.shape == (BATCH, N_PATCH, EMBED)
    assert jnp.max(jnp.abs(out - ref)) < 1e-4, "mismatch vs JAX conv reference"

    print("KERNEL_OK")
</pallas_src>

<mosaic_0001>
module attributes {stable_mosaic.version = 11 : i64} {
  func.func @embeddings_kernel(%arg0: i32, %arg1: memref<32x192xf32, #tpu.memory_space<vmem>>, %arg2: memref<192x128xf32, #tpu.memory_space<vmem>>, %arg3: memref<32x128xf32, #tpu.memory_space<vmem>>, %arg4: memref<32x128xf32, #tpu.memory_space<vmem>>) attributes {dimension_semantics = [#tpu.dimension_semantics<arbitrary>], iteration_bounds = array<i64: 1>, scalar_prefetch = 0 : i64, scratch_operands = 0 : i64, tpu.core_type = #tpu.core_type<tc>, window_params = [{pipeline_mode = #tpu.pipeline_mode<synchronous>, transform_indices = @transform_0, window_bounds = array<i64: 32, 192>}, {pipeline_mode = #tpu.pipeline_mode<synchronous>, transform_indices = @transform_1, window_bounds = array<i64: 192, 128>}, {pipeline_mode = #tpu.pipeline_mode<synchronous>, transform_indices = @transform_2, window_bounds = array<i64: 32, 128>}, {pipeline_mode = #tpu.pipeline_mode<synchronous>, transform_indices = @transform_3, window_bounds = array<i64: 32, 128>}]} {
    %c0 = arith.constant 0 : index
    %c0_0 = arith.constant 0 : index
    %0 = vector.load %arg1[%c0, %c0_0] : memref<32x192xf32, #tpu.memory_space<vmem>>, vector<32x192xf32>
    %c0_1 = arith.constant 0 : index
    %c0_2 = arith.constant 0 : index
    %1 = vector.load %arg2[%c0_1, %c0_2] : memref<192x128xf32, #tpu.memory_space<vmem>>, vector<192x128xf32>
    %cst = arith.constant dense<0.000000e+00> : vector<32x128xf32>
    %2 = tpu.matmul %0, %1, %cst {dimension_numbers = #tpu.dot_dimension_numbers<[1], [0], [0], [1], [0, 0, 1, 1], [], []>} : vector<32x192xf32>, vector<192x128xf32>, vector<32x128xf32> -> vector<32x128xf32>
    %c0_3 = arith.constant 0 : index
    %c0_4 = arith.constant 0 : index
    %3 = vector.load %arg3[%c0_3, %c0_4] : memref<32x128xf32, #tpu.memory_space<vmem>>, vector<32x128xf32>
    %4 = arith.addf %2, %3 : vector<32x128xf32>
    %c0_5 = arith.constant 0 : index
    %c0_6 = arith.constant 0 : index
    %5 = vector.load %arg4[%c0_5, %c0_6] : memref<32x128xf32, #tpu.memory_space<vmem>>, vector<32x128xf32>
    tpu.vector_store %arg4[%c0_5, %c0_6], %4 {strides = array<i32>} : memref<32x128xf32, #tpu.memory_space<vmem>>, vector<32x128xf32>,
    return
  }
  func.func @transform_0(%arg0: i32) -> (i32, i32) {
    %c0_i32 = arith.constant 0 : i32
    %c0_i32_0 = arith.constant 0 : i32
    %c0_i32_1 = arith.constant 0 : i32
    return %c0_i32, %c0_i32_0 : i32, i32
  }
  func.func @transform_1(%arg0: i32) -> (i32, i32) {
    %c0_i32 = arith.constant 0 : i32
    %c0_i32_0 = arith.constant 0 : i32
    %c0_i32_1 = arith.constant 0 : i32
    return %c0_i32, %c0_i32_0 : i32, i32
  }
  func.func @transform_2(%arg0: i32) -> (i32, i32) {
    %c0_i32 = arith.constant 0 : i32
    %c0_i32_0 = arith.constant 0 : i32
    %c0_i32_1 = arith.constant 0 : i32
    return %c0_i32, %c0_i32_0 : i32, i32
  }
  func.func @transform_3(%arg0: i32) -> (i32, i32) {
    %c0_i32 = arith.constant 0 : i32
    %c0_i32_0 = arith.constant 0 : i32
    %c0_i32_1 = arith.constant 0 : i32
    return %c0_i32, %c0_i32_0 : i32, i32
  }
}

</mosaic_0001>

<bundles_post_ra>
// kernel: siglip_vision_embeddings.1
= control target key start
LH: loop header
LB: loop body
LE: loop exit
PB: predicated region body
PF: predicated region fallthrough
CT: control target
= control target key end

     0   :  { %s347_s0 = inlined_call_operand.vmem [shape: f32[32,192], index: 0, kind: input, shape index: {}]   ;;  %s348_s1 = inlined_call_operand.vmem [shape: f32[192,128], index: 1, kind: input, shape index: {}]   ;;  %s349_s2 = inlined_call_operand.vmem [shape: f32[32,128], index: 2, kind: input, shape index: {}]   ;;  %s350_s3 = inlined_call_operand.hbm [shape: f32[32,128], index: 3, kind: output, shape index: {}]  }
   0x1   :  { %v38_v0 = vld [vmem:[%s348_s1 + $0x78] sm:$0xff]  ;;  %v37_v1 = vld [vmem:[%s348_s1 + $0x70] sm:$0xff]  ;;  %v36_v3 = vld [vmem:[%s348_s1 + $0x68] sm:$0xff] }
   0x2   :  { %64 = vmatpush.msra.mxu0 %v38_v0  ;;  %148 = vmatpush.msra.mxu2 %v38_v0  ;;  %v46_v2 = vld [vmem:[%s348_s1 + $0xb8] sm:$0xff]  ;;  %v45_v4 = vld [vmem:[%s348_s1 + $0xb0] sm:$0xff]  ;;  %v44_v5 = vld [vmem:[%s348_s1 + $0xa8] sm:$0xff] }
   0x3   :  { %149 = vmatpush.msra.mxu3 %v38_v0  ;;  %101 = vmatpush.msra.mxu1 %v46_v2  ;;  %v35_v6 = vld [vmem:[%s348_s1 + $0x60] sm:$0xff]  ;;  %v34_v8 = vld [vmem:[%s348_s1 + $0x58] sm:$0xff]  ;;  %v33_v10 = vld [vmem:[%s348_s1 + $0x50] sm:$0xff] }
   0x4   :  { %65 = vmatpush.msra.mxu0 %v37_v1  ;;  %150 = vmatpush.msra.mxu2 %v37_v1  ;;  %v43_v7 = vld [vmem:[%s348_s1 + $0xa0] sm:$0xff]  ;;  %v42_v9 = vld [vmem:[%s348_s1 + $0x98] sm:$0xff]  ;;  %v41_v11 = vld [vmem:[%s348_s1 + $0x90] sm:$0xff] }
   0x5   :  { %151 = vmatpush.msra.mxu3 %v37_v1  ;;  %102 = vmatpush.msra.mxu1 %v45_v4  ;;  %v32_v12 = vld [vmem:[%s348_s1 + $0x48] sm:$0xff] }
   0x6   :  { %66 = vmatpush.msra.mxu0 %v36_v3  ;;  %152 = vmatpush.msra.mxu2 %v36_v3 }
   0x7   :  { %153 = vmatpush.msra.mxu3 %v36_v3  ;;  %103 = vmatpush.msra.mxu1 %v44_v5 }
   0x8   :  { %67 = vmatpush.msra.mxu0 %v35_v6  ;;  %154 = vmatpush.msra.mxu2 %v35_v6 }
   0x9   :  { %155 = vmatpush.msra.mxu3 %v35_v6  ;;  %104 = vmatpush.msra.mxu1 %v43_v7 }
   0xa   :  { %68 = vmatpush.msra.mxu0 %v34_v8  ;;  %156 = vmatpush.msra.mxu2 %v34_v8 }
   0xb   :  { %157 = vmatpush.msra.mxu3 %v34_v8  ;;  %105 = vmatpush.msra.mxu1 %v42_v9 }
   0xc   :  { %8 = vsyncpa [#allocation3], 0  ;;  %69 = vmatpush.msra.mxu0 %v33_v10  ;;  %158 = vmatpush.msra.mxu2 %v33_v10  ;;  %v40_v13 = vld [vmem:[%s348_s1 + $0x88] sm:$0xff]  ;;  %v31_v14 = vld [vmem:[%s348_s1 + $0x40] sm:$0xff]  ;;  %vm51_vm0 = vcmask 523264   ;;  %s209_s28 = smov [#allocation2]  }
   0xd   :  { %159 = vmatpush.msra.mxu3 %v33_v10  ;;  %106 = vmatpush.msra.mxu1 %v41_v11  ;;  %v39_v15 = vld [vmem:[%s348_s1 + $0x80] sm:$0xff]  ;;  %v30_v16 = vld [vmem:[%s348_s1 + $0x38] sm:$0xff]  ;;  %v16_v17 = vld [vmem:[%s347_s0 + $0x8] sm:$0xff]  ;;  %s130_s29 = sshll.u32 %s209_s28, 4  ;;  %s132_s5 = sshll.u32 %s350_s3, 4  ;;  %s131_s29 = int_to_ptr.vmem [resolvable:$true] %s130_s29  ;;  %s133_s5 = int_to_ptr.hbm [resolvable:$true] %s132_s5 }
   0xe   :  { %70 = vmatpush.msra.mxu0 %v32_v12  ;;  %160 = vmatpush.msra.mxu2 %v32_v12  ;;  %v29_v18 = vld [vmem:[%s348_s1 + $0x30] sm:$0xff]  ;;  %v28_v19 = vld [vmem:[%s348_s1 + $0x28] sm:$0xff]  ;;  %v27_v20 = vld [vmem:[%s348_s1 + $0x20] sm:$0xff]  ;;  %s210_s6 = smov 128   ;;  %s211_s7 = smov 8  }
   0xf   :  { %161 = vmatpush.msra.mxu3 %v32_v12  ;;  %107 = vmatpush.msra.mxu1 %v40_v13  ;;  %v26_v21 = vld [vmem:[%s348_s1 + $0x18] sm:$0xff]  ;;  %v25_v23 = vld [vmem:[%s348_s1 + $0x10] sm:$0xff]  ;;  %v24_v24 = vld [vmem:[%s348_s1 + $0x8] sm:$0xff] }
  0x10   :  { %71 = vmatpush.msra.mxu0 %v31_v14  ;;  %162 = vmatpush.msra.mxu2 %v31_v14  ;;  %v18_v22 = vld [vmem:[%s347_s0 + $0x18] sm:$0xff]  ;;  %v23_v25 = vld [vmem:[%s348_s1] sm:$0xff]  ;;  %v17_v27 = vld [vmem:[%s347_s0 + $0x10] sm:$0xff] }
  0x11   :  { %163 = vmatpush.msra.mxu3 %v31_v14  ;;  %108 = vmatpush.msra.mxu1 %v39_v15  ;;  %v15_v26 = vld [vmem:[%s347_s0] sm:$0xff]  ;;  %v20_v29 = vld [vmem:[%s347_s0 + $0x28] sm:$0xff]  ;;  %v21_v30 = vld [vmem:[%s347_s0 + $0x30] sm:$0xff] }
  0x12   :  { %72 = vmatpush.msra.mxu0 %v30_v16  ;;  %164 = vmatpush.msra.mxu2 %v30_v16  ;;  %v19_v28 = vld [vmem:[%s347_s0 + $0x20] sm:$0xff]  ;;  %v22_v31 = vld [vmem:[%s347_s0 + $0x38] sm:$0xff]  ;;  %v48_v38 = vld [vmem:[%s349_s2 + $0x8] sm:$0xff] }
  0x13   :  { %165 = vmatpush.msra.mxu3 %v30_v16  ;;  %144 = vmatmul.msk.f32.vlgmr.msra.gmra.mxu1 %vm51_vm0, %v16_v17  ;;  %v47_v34 = vld [vmem:[%s349_s2] sm:$0xff]  ;;  %v49_v39 = vld [vmem:[%s349_s2 + $0x10] sm:$0xff]  ;;  %v50_v47 = vld [vmem:[%s349_s2 + $0x18] sm:$0xff] }
  0x14   :  { %73 = vmatpush.msra.mxu0 %v29_v18  ;;  %166 = vmatpush.msra.mxu2 %v29_v18 }
  0x15   :  { %167 = vmatpush.msra.mxu3 %v29_v18 }
  0x16   :  { %74 = vmatpush.msra.mxu0 %v28_v19  ;;  %168 = vmatpush.msra.mxu2 %v28_v19 }
  0x17   :  { %169 = vmatpush.msra.mxu3 %v28_v19 }
  0x18   :  { %75 = vmatpush.msra.mxu0 %v27_v20  ;;  %170 = vmatpush.msra.mxu2 %v27_v20 }
  0x19   :  { %171 = vmatpush.msra.mxu3 %v27_v20 }
  0x1a   :  { %76 = vmatpush.msra.mxu0 %v26_v21  ;;  %172 = vmatpush.msra.mxu2 %v26_v21 }
  0x1b   :  { %173 = vmatpush.msra.mxu3 %v26_v21  ;;  %145 = vmatmul.msk.f32.gmra.mxu1 %vm51_vm0, %v18_v22 }
  0x1c   :  { %77 = vmatpush.msra.mxu0 %v25_v23  ;;  %174 = vmatpush.msra.mxu2 %v25_v23 }
  0x1d   :  { %175 = vmatpush.msra.mxu3 %v25_v23 }
  0x1e   :  { %78 = vmatpush.msra.mxu0 %v24_v24  ;;  %176 = vmatpush.msra.mxu2 %v24_v24 }
  0x1f   :  { %177 = vmatpush.msra.mxu3 %v24_v24 }
  0x20   :  { %79 = vmatpush.msra.mxu0 %v23_v25  ;;  %178 = vmatpush.msra.mxu2 %v23_v25 }
  0x21   :  { %179 = vmatpush.msra.mxu3 %v23_v25  ;;  %80 = vmatmul.f32.vlgmr.msra.gmra.mxu0 %v15_v26 }
  0x22   :  { %83 = vmatmul.f32.vlgmr.msra.gmra.mxu2 %v17_v27  ;;  %86 = vmatmul.f32.vlgmr.msra.gmra.mxu3 %v19_v28 }
  0x23   :  { %146 = vmatmul.msk.f32.gmra.mxu1 %vm51_vm0, %v20_v29 }
  0x2a   :  { %89 = vmatmul.f32.gmra.mxu3 %v21_v30 }
  0x2b   :  { %147 = vmatmul.msk.f32.gmra.mxu1 %vm51_vm0, %v22_v31 }
  0x90   :  { %v110_v32 = vpop.f32.mrf.mxu1 }
  0x98   :  { %v113_v33 = vpop.f32.mrf.mxu1 }
  0x9e   :  { %v81_v35 = vpop.f32.mrf.mxu0 }
  0x9f   :  { %v82_v36 = vadd.f32 %v81_v35, %v47_v34 }
  0xa0   :  { %v116_v40 = vpop.f32.mrf.mxu1 }
  0xa1   :  { %v111_v37 = vadd.f32 %v110_v32, %v82_v36 }
  0xa3   :  { %122 = vst [vmem:[#allocation2] sm:$0xff] %v111_v37 }
  0xa5   :  { %v84_v41 = vpop.f32.mrf.mxu2  ;;  %v87_v42 = vpop.f32.mrf.mxu3 }
  0xa6   :  { %v85_v43 = vadd.f32 %v84_v41, %v48_v38  ;;  %v88_v44 = vadd.f32 %v87_v42, %v49_v39 }
  0xa8   :  { %v114_v45 = vadd.f32 %v113_v33, %v85_v43  ;;  %v117_v46 = vadd.f32 %v116_v40, %v88_v44  ;;  %v119_v49 = vpop.f32.mrf.mxu1 }
  0xaa   :  { %123 = vst [vmem:[#allocation2 + $0x8] sm:$0xff] %v114_v45 }
  0xab   :  { %124 = vst [vmem:[#allocation2 + $0x10] sm:$0xff] %v117_v46 }
  0xad   :  { %v90_v48 = vpop.f32.mrf.mxu3 }
  0xae   :  { %v91_v50 = vadd.f32 %v90_v48, %v50_v47 }
  0xb0   :  { %v120_v51 = vadd.f32 %v119_v49, %v91_v50 }
  0xb2   :  { %125 = vst [vmem:[#allocation2 + $0x18] sm:$0xff] %v120_v51 }
  0xb3   :  { %138 = dma.vmem_to_hbm [thread:$0]  %s131_s29, 512, %s133_s5, [#allocation3], %s210_s6, %s210_s6, %s211_s7  }
  0xb4   :  { %207 = dma.done.wait [#allocation3], 512  }
  0xb5   :  { %208 = vsyncadd [#allocation3], 4294966784 }
  0xb6   :  { %143 = vsyncpa [#allocation3], 1 }

</bundles_post_ra>
